<compile_context>
chip_gen: v6e
topology: v6e:2x2x1
jax: 0.10.0
libtpu: 0.0.40
codegen_flags: <defaults>
</compile_context>

<pallas_src>
import functools

import jax
import jax.numpy as jnp
from jax.experimental import pallas as pl
from jax.experimental.pallas import tpu as pltpu


# ---------------------------------------------------------------------------
# Shared fused step: one-hot gather + single gate dot + activations + head.
# ---------------------------------------------------------------------------
def _fused_gru_head_step(ids, h, w_comb, wo, bo, *, hidden_size, vocab_size):
    """ids: (B,1) int32, h: (B,H) f32.  Returns (h_new (B,H), out (B,O_pad))."""
    H, V = hidden_size, vocab_size
    B = h.shape[0]

    # In-kernel embedding "gather" as a one-hot operand (vocab is tiny); the
    # embedding itself is already folded into w_comb on the host.
    onehot = (ids == jax.lax.broadcasted_iota(jnp.int32, (B, V), 1)).astype(jnp.float32)

    # Single MXU dot for ALL gate pre-activations (bias already folded in).
    xh = jnp.concatenate([onehot, h], axis=-1)                          # (B, V+H)
    gates = jnp.dot(xh, w_comb, preferred_element_type=jnp.float32)     # (B, 4H)

    # Column layout: [r | z | n_x | n_h].  One sigmoid over the [r|z] half.
    rz = jax.nn.sigmoid(gates[:, : 2 * H])
    r = rz[:, :H]
    z = rz[:, H:]
    n = jnp.tanh(gates[:, 2 * H:3 * H] + r * gates[:, 3 * H:4 * H])
    h_new = (1.0 - z) * n + z * h                                        # (B, H)

    # Lane-dense Linear head (O padded to a multiple of 128).
    out = jnp.dot(h_new, wo, preferred_element_type=jnp.float32) + bo    # (B, O_pad)
    return h_new, out


# ---------------------------------------------------------------------------
# Single-step kernel (matches Decoder.forward exactly).
# ---------------------------------------------------------------------------
def _decoder_step_kernel(ids_ref, h_ref, w_comb_ref, wo_ref, bo_ref,
                         out_ref, h_new_ref, *, hidden_size, vocab_size):
    h = h_ref[0]                         # (B, H)   (h_ref is (1, B, H))
    ids = ids_ref[...]                   # (B, 1) int32
    h_new, out = _fused_gru_head_step(
        ids, h, w_comb_ref[...], wo_ref[...], bo_ref[...],
        hidden_size=hidden_size, vocab_size=vocab_size)
    # h is fully loaded above before this aliased store (required ordering).
    h_new_ref[0] = h_new
    out_ref[...] = out


@functools.partial(jax.jit, static_argnames=("output_size",))
def decoder_forward(input_ids, h_n, params, *, output_size):
    """input_ids: (1, B) int; h_n: (1, B, H) f32. Returns (output (B, O), h_n (1, B, H))."""
    B = input_ids.shape[1]
    H = h_n.shape[2]
    Kc, G4 = params["w_comb"].shape            # (V+H, 4H)
    V = Kc - H
    O_pad = params["w_out_p"].shape[1]

    ids = input_ids.astype(jnp.int32).reshape(B, 1)

    kernel_args = (ids, h_n, params["w_comb"], params["w_out_p"], params["b_out_p"])

    flops = 2 * B * (Kc * G4 + H * O_pad)
    transcendentals = 3 * B * H
    bytes_accessed = 4 * (B + B * H + Kc * G4 + H * O_pad + O_pad + B * O_pad + B * H)

    vmem_spec = pl.BlockSpec(memory_space=pltpu.MemorySpace.VMEM)
    out_p, h_new = pl.pallas_call(
        functools.partial(_decoder_step_kernel, hidden_size=H, vocab_size=V),
        out_shape=(
            jax.ShapeDtypeStruct((B, O_pad), jnp.float32),
            jax.ShapeDtypeStruct((1, B, H), jnp.float32),
        ),
        in_specs=[vmem_spec] * len(kernel_args),
        out_specs=(vmem_spec, vmem_spec),
        input_output_aliases={1: 1},   # h_n (input 1) aliased with h_new (output 1)
        cost_estimate=pl.CostEstimate(
            flops=flops, transcendentals=transcendentals, bytes_accessed=bytes_accessed),
    )(*kernel_args)

    return out_p[:, :output_size], h_new       # (B, O), (1, B, H)


# ---------------------------------------------------------------------------
# Multi-step kernel: T teacher-forced decode steps inside one pallas_call.
# Weights stay VMEM-resident (constant index_map); h carried in VMEM scratch.
# ---------------------------------------------------------------------------
def _decoder_seq_kernel(ids_ref, h0_ref, w_comb_ref, wo_ref, bo_ref,
                        out_ref, h_out_ref, h_scr, *, hidden_size, vocab_size):
    t = pl.program_id(0)

    @pl.when(t == 0)
    def _():
        h_scr[...] = h0_ref[...]

    h = h_scr[...]                       # (B, H)
    ids = ids_ref[0]                     # (B, 1) int32   (ids_ref is (1, B, 1))
    h_new, out = _fused_gru_head_step(
        ids, h, w_comb_ref[...], wo_ref[...], bo_ref[...],
        hidden_size=hidden_size, vocab_size=vocab_size)

    h_scr[...] = h_new
    h_out_ref[...] = h_new               # constant block -> written back at end
    out_ref[0] = out


@functools.partial(jax.jit, static_argnames=("output_size",))
def decoder_forward_steps(input_ids_seq, h_n, params, *, output_size):
    """Runs the Decoder forward T times (teacher forcing) in ONE kernel.

    input_ids_seq: (T, B) int; h_n: (1, B, H) f32.
    Returns (outputs (T, B, O), h_n (1, B, H)).
    """
    T, B = input_ids_seq.shape
    H = h_n.shape[2]
    Kc, G4 = params["w_comb"].shape
    V = Kc - H
    O_pad = params["w_out_p"].shape[1]

    ids = input_ids_seq.astype(jnp.int32).reshape(T, B, 1)
    h0 = h_n.reshape(B, H)

    grid_spec = pltpu.PrefetchScalarGridSpec(
        num_scalar_prefetch=0,
        grid=(T,),
        in_specs=[
            pl.BlockSpec((1, B, 1), lambda t: (t, 0, 0)),      # step-t ids
            pl.BlockSpec((B, H), lambda t: (0, 0)),            # h0 (fetched once)
            pl.BlockSpec((Kc, G4), lambda t: (0, 0)),          # fused gate weights (resident)
            pl.BlockSpec((H, O_pad), lambda t: (0, 0)),        # head weights (resident)
            pl.BlockSpec((1, O_pad), lambda t: (0, 0)),        # head bias (resident)
        ],
        out_specs=(
            pl.BlockSpec((1, B, O_pad), lambda t: (t, 0, 0)),  # per-step logits
            pl.BlockSpec((B, H), lambda t: (0, 0)),            # final hidden state
        ),
        scratch_shapes=[pltpu.VMEM((B, H), jnp.float32)],      # carried hidden state
    )

    flops = T * 2 * B * (Kc * G4 + H * O_pad)
    transcendentals = T * 3 * B * H
    bytes_accessed = 4 * (T * B + B * H + Kc * G4 + H * O_pad + O_pad
                          + T * B * O_pad + B * H)

    outs, h_T = pl.pallas_call(
        functools.partial(_decoder_seq_kernel, hidden_size=H, vocab_size=V),
        out_shape=(
            jax.ShapeDtypeStruct((T, B, O_pad), jnp.float32),
            jax.ShapeDtypeStruct((B, H), jnp.float32),
        ),
        grid_spec=grid_spec,
        compiler_params=pltpu.CompilerParams(dimension_semantics=("arbitrary",)),
        cost_estimate=pl.CostEstimate(
            flops=flops, transcendentals=transcendentals, bytes_accessed=bytes_accessed),
    )(ids, h0, params["w_comb"], params["w_out_p"], params["b_out_p"])

    return outs[:, :, :output_size], h_T[None]   # (T, B, O), (1, B, H)


# ---------------------------------------------------------------------------
# Parameter construction (PyTorch-equivalent init) + host-side weight fusion.
# ---------------------------------------------------------------------------
def _orthogonal(key, rows, cols):
    """Row-/column-orthogonal (rows, cols) matrix, like nn.init.orthogonal_."""
    big, small = max(rows, cols), min(rows, cols)
    a = jax.random.normal(key, (big, small), jnp.float32)
    q, r = jnp.linalg.qr(a)
    q = q * jnp.sign(jnp.diagonal(r))[None, :]
    if rows < cols:
        q = q.T
    return q


def init_params(key, vocab_size, embedding_size, hidden_size, output_size):
    H, E, V = hidden_size, embedding_size, vocab_size
    ks = jax.random.split(key, 6)
    scale = 1.0 / (H ** 0.5)

    emb = jax.random.normal(ks[0], (V, E), jnp.float32)

    # PyTorch GRU parameter shapes: weight_ih (3H, E), weight_hh (3H, H), biases (3H,).
    w_ih = jax.random.uniform(ks[1], (3 * H, E), jnp.float32, -scale, scale)
    w_hh = jax.random.uniform(ks[2], (3 * H, H), jnp.float32, -scale, scale)
    b_ih = jax.random.uniform(ks[3], (3 * H,), jnp.float32, -scale, scale)
    b_hh = jax.random.uniform(ks[4], (3 * H,), jnp.float32, -scale, scale)

    w_ir, w_iz, w_in = w_ih[:H], w_ih[H:2 * H], w_ih[2 * H:]
    w_hr, w_hz, w_hn = w_hh[:H], w_hh[H:2 * H], w_hh[2 * H:]
    b_ir, b_iz, b_in = b_ih[:H], b_ih[H:2 * H], b_ih[2 * H:]
    b_hr, b_hz, b_hn = b_hh[:H], b_hh[H:2 * H], b_hh[2 * H:]

    # Gate column groups [r | z | n_x | n_h]; zero blocks keep the x-part and
    # h-part of the n gate separate (matches PyTorch's r * (h@W_hn.T + b_hn)).
    w_x_gates = jnp.concatenate(
        [w_ir.T, w_iz.T, w_in.T, jnp.zeros((E, H), jnp.float32)], axis=1)     # (E, 4H)
    w_h_gates = jnp.concatenate(
        [w_hr.T, w_hz.T, jnp.zeros((H, H), jnp.float32), w_hn.T], axis=1)     # (H, 4H)
    b_gates = jnp.concatenate([b_ir + b_hr, b_iz + b_hz, b_in, b_hn])[None, :]  # (1, 4H)

    # Perf item 1: pre-fuse the embedding through the input-gate weights and
    # fold the gate bias into the rows (one-hot selects exactly one row).
    emb_wx_b = jnp.dot(emb, w_x_gates,
                       precision=jax.lax.Precision.HIGHEST) + b_gates         # (V, 4H)
    # Perf item 2: one combined gate-matmul operand [emb_wx_b ; w_h_gates].
    w_comb = jnp.concatenate([emb_wx_b, w_h_gates], axis=0)                   # (V+H, 4H)

    # Output head: orthogonal (O, H) weights (nn.init.orthogonal_), zero bias,
    # padded to a lane-dense multiple of 128 output columns.
    w_out = _orthogonal(ks[5], output_size, H)                                # (O, H)
    b_out = jnp.zeros((output_size,), jnp.float32)
    o_pad = 128 * max(1, -(-output_size // 128))
    w_out_p = jnp.zeros((H, o_pad), jnp.float32).at[:, :output_size].set(w_out.T)
    b_out_p = jnp.zeros((1, o_pad), jnp.float32).at[:, :output_size].set(b_out)

    return {
        # fused kernel parameters
        "w_comb": w_comb,            # (V+H, 4H)
        "w_out_p": w_out_p,          # (H, O_pad)
        "b_out_p": b_out_p,          # (1, O_pad)
        # raw PyTorch-equivalent parameters (used by the pure-JAX reference)
        "embedding": emb,
        "w_ih": w_ih, "w_hh": w_hh, "b_ih": b_ih, "b_hh": b_hh,
        "w_out": w_out, "b_out": b_out,
    }


# ---------------------------------------------------------------------------
# Pure-JAX reference with PyTorch GRU/Linear semantics (unfused weights).
# ---------------------------------------------------------------------------
def _decoder_reference_step(p, ids_b, h):
    H = h.shape[1]
    x = p["embedding"][ids_b]                                   # (B, E)
    gi = x @ p["w_ih"].T + p["b_ih"]
    gh = h @ p["w_hh"].T + p["b_hh"]
    r = jax.nn.sigmoid(gi[:, :H] + gh[:, :H])
    z = jax.nn.sigmoid(gi[:, H:2 * H] + gh[:, H:2 * H])
    n = jnp.tanh(gi[:, 2 * H:] + r * gh[:, 2 * H:])
    h_new = (1.0 - z) * n + z * h
    out = h_new @ p["w_out"].T + p["b_out"]
    return out, h_new


if __name__ == "__main__":
    EMBEDDING_SIZE = 10
    VOCAB = 20
    BATCH = 8
    HIDDEN = 32
    OUTPUT = 16
    STEPS = 4

    key = jax.random.PRNGKey(0)
    kp, kid, kh, kseq = jax.random.split(key, 4)

    params = init_params(kp, VOCAB, EMBEDDING_SIZE, HIDDEN, OUTPUT)
    input_ids = jax.random.randint(kid, (1, BATCH), 0, VOCAB, dtype=jnp.int32)
    h_n = jax.random.normal(kh, (1, BATCH, HIDDEN), jnp.float32)

    # --- single step (matches Decoder.forward) -----------------------------
    out, h_new = decoder_forward(input_ids, h_n, params, output_size=OUTPUT)
    jax.block_until_ready((out, h_new))

    ref_out, ref_h = _decoder_reference_step(params, input_ids[0], h_n[0])
    assert out.shape == (BATCH, OUTPUT) and h_new.shape == (1, BATCH, HIDDEN)
    assert jnp.allclose(out, ref_out, atol=1e-4, rtol=1e-4)
    assert jnp.allclose(h_new[0], ref_h, atol=1e-4, rtol=1e-4)

    # --- multi-step (T forwards fused into ONE kernel, weights resident) ---
    ids_seq = jax.random.randint(kseq, (STEPS, BATCH), 0, VOCAB, dtype=jnp.int32)
    outs, h_T = decoder_forward_steps(ids_seq, h_n, params, output_size=OUTPUT)
    jax.block_until_ready((outs, h_T))

    h_ref = h_n[0]
    ref_outs = []
    for t in range(STEPS):
        o_t, h_ref = _decoder_reference_step(params, ids_seq[t], h_ref)
        ref_outs.append(o_t)
    ref_outs = jnp.stack(ref_outs)
    assert outs.shape == (STEPS, BATCH, OUTPUT) and h_T.shape == (1, BATCH, HIDDEN)
    assert jnp.allclose(outs, ref_outs, atol=1e-4, rtol=1e-4)
    assert jnp.allclose(h_T[0], h_ref, atol=1e-4, rtol=1e-4)

    print("KERNEL_OK")
</pallas_src>

<mosaic_0001>
module attributes {stable_mosaic.version = 11 : i64} {
  func.func @_decoder_step_kernel(%arg0: memref<8x1xi32, #tpu.memory_space<vmem>>, %arg1: memref<1x8x32xf32, #tpu.memory_space<vmem>>, %arg2: memref<52x128xf32, #tpu.memory_space<vmem>>, %arg3: memref<32x128xf32, #tpu.memory_space<vmem>>, %arg4: memref<1x128xf32, #tpu.memory_space<vmem>>, %arg5: memref<8x128xf32, #tpu.memory_space<vmem>>, %arg6: memref<1x8x32xf32, #tpu.memory_space<vmem>>) attributes {dimension_semantics = [], scalar_prefetch = 0 : i64, scratch_operands = 0 : i64, tpu.core_type = #tpu.core_type<tc>} {
    %c0 = arith.constant 0 : index
    %c0_0 = arith.constant 0 : index
    %c0_1 = arith.constant 0 : index
    %0 = vector.load %arg1[%c0, %c0_0, %c0_1] : memref<1x8x32xf32, #tpu.memory_space<vmem>>, vector<1x8x32xf32>
    %1 = vector.shape_cast %0 : vector<1x8x32xf32> to vector<8x32xf32>
    %c0_2 = arith.constant 0 : index
    %c0_3 = arith.constant 0 : index
    %2 = vector.load %arg0[%c0_2, %c0_3] : memref<8x1xi32, #tpu.memory_space<vmem>>, vector<8x1xi32>
    %c0_4 = arith.constant 0 : index
    %c0_5 = arith.constant 0 : index
    %3 = vector.load %arg2[%c0_4, %c0_5] : memref<52x128xf32, #tpu.memory_space<vmem>>, vector<52x128xf32>
    %c0_6 = arith.constant 0 : index
    %c0_7 = arith.constant 0 : index
    %4 = vector.load %arg3[%c0_6, %c0_7] : memref<32x128xf32, #tpu.memory_space<vmem>>, vector<32x128xf32>
    %c0_8 = arith.constant 0 : index
    %c0_9 = arith.constant 0 : index
    %5 = vector.load %arg4[%c0_8, %c0_9] : memref<1x128xf32, #tpu.memory_space<vmem>>, vector<1x128xf32>
    %6 = tpu.iota {dimensions = array<i32: 1>} : vector<8x20xi32>
    %7 = vector.broadcast %2 : vector<8x1xi32> to vector<8x20xi32>
    %8 = arith.cmpi eq, %7, %6 : vector<8x20xi32>
    %9 = arith.extui %8 : vector<8x20xi1> to vector<8x20xi32>
    %10 = arith.sitofp %9 : vector<8x20xi32> to vector<8x20xf32>
    %11 = tpu.concatenate %10, %1 in 1 : vector<8x20xf32>, vector<8x32xf32> -> vector<8x52xf32>
    %cst = arith.constant dense<0.000000e+00> : vector<8x128xf32>
    %12 = tpu.matmul %11, %3, %cst {dimension_numbers = #tpu.dot_dimension_numbers<[1], [0], [0], [1], [0, 0, 1, 1], [], []>} : vector<8x52xf32>, vector<52x128xf32>, vector<8x128xf32> -> vector<8x128xf32>
    %13 = vector.extract_strided_slice %12 {offsets = [0, 0], sizes = [8, 64], strides = [1, 1]} : vector<8x128xf32> to vector<8x64xf32>
    %14 = arith.negf %13 : vector<8x64xf32>
    %15 = math.exp %14 : vector<8x64xf32>
    %cst_10 = arith.constant 1.000000e+00 : f32
    %16 = vector.broadcast %cst_10 : f32 to vector<8x64xf32>
    %17 = arith.addf %16, %15 : vector<8x64xf32>
    %18 = arith.divf %16, %17 : vector<8x64xf32>
    %19 = vector.extract_strided_slice %18 {offsets = [0, 0], sizes = [8, 32], strides = [1, 1]} : vector<8x64xf32> to vector<8x32xf32>
    %20 = vector.extract_strided_slice %18 {offsets = [0, 32], sizes = [8, 32], strides = [1, 1]} : vector<8x64xf32> to vector<8x32xf32>
    %21 = vector.extract_strided_slice %12 {offsets = [0, 64], sizes = [8, 32], strides = [1, 1]} : vector<8x128xf32> to vector<8x32xf32>
    %22 = vector.extract_strided_slice %12 {offsets = [0, 96], sizes = [8, 32], strides = [1, 1]} : vector<8x128xf32> to vector<8x32xf32>
    %23 = arith.mulf %19, %22 : vector<8x32xf32>
    %24 = arith.addf %21, %23 : vector<8x32xf32>
    %25 = math.tanh %24 : vector<8x32xf32>
    %cst_11 = arith.constant 1.000000e+00 : f32
    %26 = vector.broadcast %cst_11 : f32 to vector<8x32xf32>
    %27 = arith.subf %26, %20 : vector<8x32xf32>
    %28 = arith.mulf %27, %25 : vector<8x32xf32>
    %29 = arith.mulf %20, %1 : vector<8x32xf32>
    %30 = arith.addf %28, %29 : vector<8x32xf32>
    %cst_12 = arith.constant dense<0.000000e+00> : vector<8x128xf32>
    %31 = tpu.matmul %30, %4, %cst_12 {dimension_numbers = #tpu.dot_dimension_numbers<[1], [0], [0], [1], [0, 0, 1, 1], [], []>} : vector<8x32xf32>, vector<32x128xf32>, vector<8x128xf32> -> vector<8x128xf32>
    %32 = vector.broadcast %5 : vector<1x128xf32> to vector<8x128xf32>
    %33 = arith.addf %31, %32 : vector<8x128xf32>
    %c0_13 = arith.constant 0 : index
    %c0_14 = arith.constant 0 : index
    %c0_15 = arith.constant 0 : index
    %34 = vector.load %arg6[%c0_13, %c0_14, %c0_15] : memref<1x8x32xf32, #tpu.memory_space<vmem>>, vector<1x8x32xf32>
    %35 = vector.shape_cast %34 : vector<1x8x32xf32> to vector<8x32xf32>
    %36 = vector.shape_cast %30 : vector<8x32xf32> to vector<1x8x32xf32>
    tpu.vector_store %arg6[%c0_13, %c0_14, %c0_15], %36 {strides = array<i32>} : memref<1x8x32xf32, #tpu.memory_space<vmem>>, vector<1x8x32xf32>,
    %c0_16 = arith.constant 0 : index
    %c0_17 = arith.constant 0 : index
    %37 = vector.load %arg5[%c0_16, %c0_17] : memref<8x128xf32, #tpu.memory_space<vmem>>, vector<8x128xf32>
    tpu.vector_store %arg5[%c0_16, %c0_17], %33 {strides = array<i32>} : memref<8x128xf32, #tpu.memory_space<vmem>>, vector<8x128xf32>,
    return
  }
}

</mosaic_0001>

<bundles_post_ra>
// kernel: decoder_forward.1
= control target key start
LH: loop header
LB: loop body
LE: loop exit
PB: predicated region body
PF: predicated region fallthrough
CT: control target
= control target key end

     0   :  { %12 = vsyncpa [#allocation3], 0  ;;  %s504_s0 = inlined_call_operand.vmem [shape: s32[8,1], index: 0, kind: input, shape index: {}]   ;;  %s505_s1 = inlined_call_operand.vmem [shape: f32[1,8,32], index: 1, kind: input, shape index: {}, may-alias: {1,6}]   ;;  %s506_s2 = inlined_call_operand.hbm [shape: f32[52,128], index: 2, kind: input, shape index: {}]   ;;  %s507_s3 = inlined_call_operand.hbm [shape: f32[32,128], index: 3, kind: input, shape index: {}]   ;;  %s508_s4 = inlined_call_operand.vmem [shape: f32[1,128], index: 4, kind: input, shape index: {}]   ;;  %s509_s5 = inlined_call_operand.hbm [shape: f32[8,128], index: 5, kind: output, shape index: {0}]   ;;  %s510_s6 = inlined_call_operand.vmem [shape: f32[1,8,32], index: 6, kind: output, shape index: {1}, may-alias: {1,6}]  }
   0x1   :  { %13 = vsyncpa [#allocation6], 0 }
   0x2   :  { %14 = vsyncpa [#allocation4], 0  ;;  %s422_s21 = smov [#allocation2]  }
   0x3   :  { %s24_s22 = sshll.u32 %s422_s21, 4  ;;  %s25_s22 = int_to_ptr.vmem [resolvable:$true] %s24_s22 }
   0x4   :  { %s364_s23 = scalar_lea.vmem %s25_s22, 896  ;;  %p369_p1 = scmp.lt.s32.totalorder %s25_s22, %s25_s22 }
   0x5   :  { %p365_p0 = scmp.ne.s32.totalorder %s25_s22, %s364_s23  ;;  %p370_p2 = scmp.lt.s32.totalorder %s364_s23, %s364_s23 }
   0x7   :  { %p371_p3 = por %p370_p2, %p369_p1 }
   0x9   :  { %p372_p4 = pnand %p371_p3, %p365_p0 }
   0xb   :  { %375 = shalt.err (!%p372_p4)
}
   0xc   :  { %s423_s24 = smov 128   ;;  %s424_s25 = smov 8  }
   0xd   :  { %30 = dma.hbm_to_vmem [thread:$0]  %s506_s2, 896, %s25_s22, [#allocation3], %s423_s24, %s423_s24, %s424_s25  }
   0xe   :  { %s425_s28 = smov [#allocation5]  }
   0xf   :  { %s36_s29 = sshll.u32 %s425_s28, 4  ;;  %s37_s29 = int_to_ptr.vmem [resolvable:$true] %s36_s29 }
  0x10   :  { %s384_s30 = scalar_lea.vmem %s37_s29, 512  ;;  %p389_p6 = scmp.lt.s32.totalorder %s37_s29, %s37_s29 }
  0x11   :  { %p385_p5 = scmp.ne.s32.totalorder %s37_s29, %s384_s30  ;;  %p390_p7 = scmp.lt.s32.totalorder %s384_s30, %s384_s30 }
  0x13   :  { %p391_p8 = por %p390_p7, %p389_p6 }
  0x15   :  { %p392_p9 = pnand %p391_p8, %p385_p5 }
  0x17   :  { %395 = shalt.err (!%p392_p9)
}
  0x18   :  { %42 = dma.hbm_to_vmem [thread:$0]  %s507_s3, 512, %s37_s29, [#allocation6], %s423_s24, %s423_s24, %s424_s25  }
  0x19   :  { %416 = dma.done.wait [#allocation3], 896  }
  0x1a   :  { %417 = vsyncadd [#allocation3], 4294966400 }
  0x1b   :  { %418 = dma.done.wait [#allocation6], 512  }
  0x1c   :  { %419 = vsyncadd [#allocation6], 4294966784  ;;  %v426_v0 = vmov 0   ;;  %v427_v1 = vmov 0.0   ;;  %vm83_vm0 = vcmask 1043456   ;;  %v52_v2 = vld [vmem:[%s504_s0] sm:$0xff]  ;;  %v65_v11 = vlaneseq }
  0x1d   :  { %349 = vset.pattern.permute.xlu0 %v426_v0  ;;  %309 = vmatprep.subr.mxu0 %v427_v1  ;;  %v59_v3 = vld [vmem:[#allocation2 + $0x30] sm:$0xf]  ;;  %v58_v4 = vld [vmem:[#allocation2 + $0x28] sm:$0xff]  ;;  %v51_v5 = vld [vmem:[%s505_s1] sm:$0xff]  ;;  %vm428_vm1 = vmmov 0   ;;  %s429_s0 = smov 20  }
  0x1e   :  { %326 = vmatprep.subr.mxu1 %v427_v1  ;;  %68 = vperm.xlu0 %349, %v52_v2   ;;  %v57_v6 = vld [vmem:[#allocation2 + $0x20] sm:$0xff]  ;;  %v56_v7 = vld [vmem:[#allocation2 + $0x18] sm:$0xff]  ;;  %v55_v8 = vld [vmem:[#allocation2 + $0x10] sm:$0xff]  ;;  %v66_v12 = vand.u32 127, %v65_v11  ;;  %vm77_vm3 = vcmask 162816   ;;  %vm79_vm4 = vcmask 424960  }
  0x1f   :  { %310 = vmatpush3.msk.msra.mxu0 %vm83_vm0, %v59_v3  ;;  %323 = vmatprep.mubr.msk.f32.mxu0 %vm428_vm1, %v427_v1  ;;  %v54_v9 = vld [vmem:[#allocation2 + $0x8] sm:$0xff]  ;;  %v53_v10 = vld [vmem:[#allocation2] sm:$0xff]  ;;  %s430_s1 = smov 32   ;;  %s431_s11 = smov 64   ;;  %v63_v27 = vld [vmem:[#allocation5 + $0x18] sm:$0xff]  ;;  %vm194_vm5 = vcmask 261120  }
  0x20   :  { %311 = vmatprep.subr.mxu0 %v427_v1  ;;  %334 = vmatprep.mubr.msk.f32.mxu1 %vm428_vm1, %v427_v1  ;;  %v62_v28 = vld [vmem:[#allocation5 + $0x10] sm:$0xff]  ;;  %v61_v29 = vld [vmem:[#allocation5 + $0x8] sm:$0xff]  ;;  %v60_v30 = vld [vmem:[#allocation5] sm:$0xff]  ;;  %s432_s12 = smov 96   ;;  %s433_s17 = smov [#allocation7]  }
  0x21   :  { %312 = vmatpush3.msra.mxu0 %v58_v4  ;;  %327 = vmatpush3.msra.mxu1 %v63_v27  ;;  %v294_v39 = vld [vmem:[%s508_s4] ss:$0 sm:$0xff]  ;;  %s276_s18 = sshll.u32 %s433_s17, 4  ;;  %s277_s18 = int_to_ptr.vmem [resolvable:$true] %s276_s18 }
  0x22   :  { %313 = vmatprep.subr.mxu0 %v427_v1  ;;  %74 = vrot.lane.b32.xlu0 %v51_v5, %s429_s0  ;;  %s396_s19 = scalar_lea.vmem %s277_s18, 128  ;;  %p401_p11 = scmp.lt.s32.totalorder %s277_s18, %s277_s18 }
  0x23   :  { %314 = vmatpush3.msra.mxu0 %v57_v6  ;;  %328 = vmatprep.subr.mxu1 %v427_v1  ;;  %p397_p10 = scmp.ne.s32.totalorder %s277_s18, %s396_s19  ;;  %p402_p12 = scmp.lt.s32.totalorder %s396_s19, %s396_s19 }
  0x24   :  { %315 = vmatprep.subr.mxu0 %v427_v1  ;;  %329 = vmatpush3.msra.mxu1 %v62_v28 }
  0x25   :  { %316 = vmatpush3.msra.mxu0 %v56_v7  ;;  %330 = vmatprep.subr.mxu1 %v427_v1  ;;  %p403_p13 = por %p402_p12, %p401_p11 }
  0x26   :  { %317 = vmatprep.subr.mxu0 %v427_v1  ;;  %331 = vmatpush3.msra.mxu1 %v61_v29 }
  0x27   :  { %318 = vmatpush3.msra.mxu0 %v55_v8  ;;  %332 = vmatprep.subr.mxu1 %v427_v1  ;;  %p404_p0 = pnand %p403_p13, %p397_p10 }
  0x28   :  { %319 = vmatprep.subr.mxu0 %v427_v1  ;;  %333 = vmatpush3.msra.mxu1 %v60_v30 }
  0x29   :  { %320 = vmatpush3.msra.mxu0 %v54_v9 }
  0x2a   :  { %321 = vmatprep.subr.mxu0 %v427_v1 }
  0x2b   :  { %322 = vmatpush3.msra.mxu0 %v53_v10 }
  0x99   :  { %v69_v13 = vpop.permute.xlu0 %68 }
  0x9a   :  { %vm70_vm2 = vcmp.eq.s32.totalorder %v69_v13, %v66_v12 }
  0x9b   :  { %v290_v14 = vsel %vm70_vm2, 1.0, %v427_v1 }
  0x9d   :  { %v75_v15 = vpop.permute.xlu0 %74 }
  0x9e   :  { %v78_v16 = vsel %vm77_vm3, %v290_v14, %v75_v15 }
  0x9f   :  { %324 = vmatmul.mubr.msk.f32.vlgmr.msra.gmra.mxu0 %vm79_vm4, %v78_v16 }
 0x15f   :  { %v153_v17 = vpop.f32.mrf.mxu0 }
 0x160   :  { %164 = vrot.lane.b32.xlu1 %v153_v17, %s430_s1  ;;  %v293_v19 = vmul.f32 -1.442695, %v153_v17 }
 0x161   :  { %v325_v18 = vpop.f32.mrf.mxu0 }
 0x162   :  { %350 = vpow2.f32 %v293_v19 }
 0x16f   :  { %v351_v20 = vpop.eup %350 }
 0x170   :  { %v160_v21 = vadd.f32 1.0, %v351_v20 }
 0x172   :  { %352 = vrcp.f32 %v160_v21 }
 0x17f   :  { %v353_v22 = vpop.eup %352 }
 0x180   :  { %v174_v33 = vsub.f32 1.0, %v353_v22 }
 0x1d2   :  { %v165_v23 = vpop.permute.xlu1 %164 }
 0x1d3   :  { %v167_v24 = vmul.f32 %v353_v22, %v165_v23 }
 0x1d5   :  { %169 = vrot.lane.b32.xlu1 %v167_v24, %s431_s11 }
 0x1d9   :  { %180 = vrot.lane.b32.xlu1 %v51_v5, %s430_s1 }
 0x247   :  { %v170_v25 = vpop.permute.xlu1 %169 }
 0x248   :  { %v172_v26 = vadd.f32 %v170_v25, %v153_v17 }
 0x24a   :  { %354 = vtanh.f32 %v172_v26 }
 0x24b   :  { %v181_v32 = vpop.permute.xlu1 %180 }
 0x24c   :  { %v183_v35 = vmul.f32 %v353_v22, %v181_v32 }
 0x257   :  { %v355_v31 = vpop.eup %354 }
 0x258   :  { %176 = vrot.lane.b32.xlu0 %v355_v31, %s432_s12 }
 0x2ca   :  { %v177_v34 = vpop.permute.xlu0 %176 }
 0x2cb   :  { %v179_v36 = vmul.f32 %v177_v34, %v174_v33 }
 0x2cd   :  { %v184_v37 = vadd.f32 %v183_v35, %v179_v36 }
 0x2cf   :  { %192 = vrot.lane.b32.xlu0 %v184_v37, %s432_s12 }
 0x341   :  { %v193_v38 = vpop.permute.xlu0 %192 }
 0x342   :  { %268 = vst.msk [vmem:[%s510_s6] sm:$0xff] %vm194_vm5, %v193_v38  ;;  %335 = vmatmul.mubr.msk.f32.vlgmr.msra.gmra.mxu1 %vm194_vm5, %v193_v38 }
 0x402   :  { %v263_v40 = vpop.f32.mrf.mxu1 }
 0x403   :  { %v264_v41 = vadd.f32 %v294_v39, %v263_v40 }
 0x404   :  { %v336_v42 = vpop.f32.mrf.mxu1 }
 0x405   :  { %269 = vst [vmem:[#allocation7] sm:$0xff] %v264_v41 }
 0x406   :  { %407 = shalt.err (!%p404_p0)
}
 0x407   :  { %279 = dma.vmem_to_hbm [thread:$0]  %s277_s18, 128, %s509_s5, [#allocation4]  }
 0x408   :  { %420 = dma.done.wait [#allocation4], 128  }
 0x409   :  { %421 = vsyncadd [#allocation4], 4294967168 }
 0x40a   :  { %287 = vsyncpa [#allocation3], 1 }
 0x40b   :  { %288 = vsyncpa [#allocation6], 1 }
 0x40c   :  { %289 = vsyncpa [#allocation4], 1 }

</bundles_post_ra>
